<compile_context>
chip_gen: v6e
topology: v6e:2x2x1
jax: 0.10.0
libtpu: 0.0.40
codegen_flags: <defaults>
</compile_context>

<pallas_src>
import jax
import jax.numpy as jnp
from jax.experimental import pallas as pl
from jax.experimental.pallas import tpu as pltpu


def _round_up(x, m):
    return ((x + m - 1) // m) * m


def _working_set_bytes(t, k_pad, d_pad, pos_bytes):
    # Double-buffered per-step VMEM: patches + weight + pos + out blocks.
    return 2 * (t * k_pad * 2            # patches tile, bf16
                + k_pad * d_pad * 2      # weight, bf16
                + t * d_pad * pos_bytes  # pos tile
                + t * d_pad * 4)         # out tile, f32


def _choose_seq_tile(s, b, k_pad, d_pad, pos_bytes):
    """Pick sequence tile T (multiple of 16) and padded length S_pad (multiple of T)."""
    s16 = _round_up(s, 16)
    if s16 <= 512:
        t, s_pad = s16, s16
    else:
        candidates = (512, 448, 384, 320, 256, 192, 128)
        t = None
        for c in candidates:  # largest tile with acceptable padding waste
            if (_round_up(s16, c) - s16) / s16 <= 0.125:
                t = c
                break
        if t is None:
            t = min(candidates, key=lambda c: _round_up(s16, c) - s16)
        s_pad = _round_up(s16, t)

    # Keep double-buffered working set comfortably inside v7x's 64 MiB VMEM.
    while _working_set_bytes(t, k_pad, d_pad, pos_bytes) > (28 << 20) and t > 16:
        t = _round_up(t // 2, 16)
        s_pad = _round_up(s16, t)

    # Avoid a degenerate 1-2 step grid: no DMA/compute/writeback overlap and an
    # idle TensorCore on v7x.  Halve T until we have >= 3 total grid steps.
    while b * (s_pad // t) < 3 and t > 16:
        t = _round_up(t // 2, 16)
        s_pad = _round_up(s16, t)

    return t, s_pad, _working_set_bytes(t, k_pad, d_pad, pos_bytes)


def _embed_kernel(patches_ref, w_ref, pos_ref, out_ref):
    # patches_ref: (T, K_pad)      bf16  -- one seq-tile of one batch element (batch squeezed)
    # w_ref:       (K_pad, D_pad)  bf16  -- conv weight as projection (grid-invariant)
    # pos_ref:     (T, D_pad)      f32/bf16 -- pos tile, row 0 already has cls folded in;
    #                                        invariant across the inner batch loop
    # out_ref:     (T, D_pad)      f32   -- dense lane-aligned store (batch squeezed)
    pe = jnp.dot(patches_ref[...], w_ref[...], preferred_element_type=jnp.float32)
    out_ref[...] = (pe + pos_ref[...].astype(jnp.float32)).astype(out_ref.dtype)


def clip_vision_embeddings(pixel_values, conv_weight, class_embedding, pos_embedding,
                           patch_size, *, pos_in_bf16=False):
    """pixel_values: [B, 3, H, W] f32 (NCHW); conv_weight: [D, 3, P, P] (OIHW);
    class_embedding: [D]; pos_embedding: [num_patches+1, D].
    Returns [B, num_patches+1, D] f32."""
    B, C, H, W = pixel_values.shape
    D = conv_weight.shape[0]
    P = patch_size
    nh, nw = H // P, W // P
    N = nh * nw                      # num_patches
    S = N + 1                        # num_positions (cls + patches)
    K = C * P * P
    K_pad = _round_up(K, 128)        # lane-align contraction dim
    D_pad = _round_up(D, 128)        # lane-align output dim (dense unmasked vst)
    pos_dtype = jnp.bfloat16 if pos_in_bf16 else jnp.float32
    pos_bytes = 2 if pos_in_bf16 else 4
    T, S_pad, ws_bytes = _choose_seq_tile(S, B, K_pad, D_pad, pos_bytes)

    # --- glue: im2col in bf16, (c, ph, pw) flatten order matching conv_weight ---
    x = pixel_values.astype(jnp.bfloat16)
    x = x.reshape(B, C, nh, P, nw, P)
    x = jnp.transpose(x, (0, 2, 4, 1, 3, 5))          # [B, nh, nw, C, P, P]
    patches = x.reshape(B, N, K)
    # Prepend one zero "cls" patch row; pad seq/K dims to tile boundaries.
    patches = jnp.pad(patches, ((0, 0), (1, S_pad - S), (0, K_pad - K)))

    # conv weight [D, C, P, P] -> [K, D], zero-pad K and D (same flatten order).
    w = conv_weight.reshape(D, K).T.astype(jnp.bfloat16)
    w = jnp.pad(w, ((0, K_pad - K), (0, D_pad - D)))

    # Position table with class embedding folded into row 0; zero cls patch row
    # then yields exactly class_embedding + pos[0]. Padded rows/cols are zero.
    pos = pos_embedding.astype(jnp.float32)
    pos = pos.at[0].add(class_embedding.astype(jnp.float32))
    pos = jnp.pad(pos, ((0, S_pad - S), (0, D_pad - D))).astype(pos_dtype)

    vmem_limit = int(min(64 << 20, max(2 * ws_bytes, 16 << 20)))

    out = pl.pallas_call(
        _embed_kernel,
        out_shape=jax.ShapeDtypeStruct((B, S_pad, D_pad), jnp.float32),
        grid_spec=pltpu.PrefetchScalarGridSpec(
            num_scalar_prefetch=0,
            # Seq-tiles outermost, batch innermost: w (constant) and pos (s-only)
            # keep the same block index across the inner batch loop -> no re-DMA.
            grid=(S_pad // T, B),
            in_specs=[
                pl.BlockSpec((pl.Squeezed(), T, K_pad), lambda s, b: (b, s, 0)),
                pl.BlockSpec((K_pad, D_pad), lambda s, b: (0, 0)),
                pl.BlockSpec((T, D_pad), lambda s, b: (s, 0)),
            ],
            out_specs=pl.BlockSpec((pl.Squeezed(), T, D_pad), lambda s, b: (b, s, 0)),
        ),
        compiler_params=pltpu.CompilerParams(
            dimension_semantics=("parallel", "parallel"),
            vmem_limit_bytes=vmem_limit,
        ),
    )(patches, w, pos)

    if S_pad != S or D_pad != D:
        out = out[:, :S, :D]
    return out


def _reference(pixel_values, conv_weight, class_embedding, pos_embedding, patch_size):
    """Pure-JAX f32 reference mirroring the torch forward pass."""
    B, C, H, W = pixel_values.shape
    D = conv_weight.shape[0]
    P = patch_size
    patch_embeds = jax.lax.conv_general_dilated(
        pixel_values.astype(jnp.float32),
        conv_weight.astype(jnp.float32),
        window_strides=(P, P),
        padding="VALID",
        dimension_numbers=("NCHW", "OIHW", "NCHW"),
    )  # [B, D, nh, nw]
    patch_embeds = patch_embeds.reshape(B, D, -1).transpose(0, 2, 1)  # [B, N, D]
    class_embeds = jnp.broadcast_to(class_embedding.reshape(1, 1, D), (B, 1, D))
    emb = jnp.concatenate([class_embeds, patch_embeds], axis=1)
    return emb + pos_embedding[None, :, :]


if __name__ == "__main__":
    # Small config consistent with the module: hidden_size=32, image_size=16, patch_size=4
    B = 2
    C = 3              # Conv2d in_channels is hard-coded to 3 in the module
    image_size = 16
    patch_size = 4
    hidden = 32
    num_patches = (image_size // patch_size) ** 2
    num_positions = num_patches + 1

    key = jax.random.PRNGKey(0)
    k0, k1, k2, k3 = jax.random.split(key, 4)
    pixel_values = jax.random.normal(k0, (B, C, image_size, image_size), jnp.float32)
    conv_weight = jax.random.normal(k1, (hidden, C, patch_size, patch_size), jnp.float32) * 0.02
    class_embedding = jax.random.normal(k2, (hidden,), jnp.float32)
    pos_embedding = jax.random.normal(k3, (num_positions, hidden), jnp.float32) * 0.02

    out = clip_vision_embeddings(pixel_values, conv_weight, class_embedding,
                                 pos_embedding, patch_size)
    out = jax.block_until_ready(out)

    ref = _reference(pixel_values, conv_weight, class_embedding, pos_embedding, patch_size)
    assert out.shape == (B, num_positions, hidden), out.shape
    # bf16 matmul operands with f32 accumulation -> loosened tolerance vs f32 reference.
    assert jnp.allclose(out, ref, atol=2e-2, rtol=2e-2), float(jnp.max(jnp.abs(out - ref)))
    print("KERNEL_OK")
</pallas_src>

<mosaic_0001>
module attributes {stable_mosaic.version = 11 : i64} {
  func.func @_embed_kernel(%arg0: i32, %arg1: i32, %arg2: memref<1x16x128xbf16, #tpu.memory_space<vmem>>, %arg3: memref<128x128xbf16, #tpu.memory_space<vmem>>, %arg4: memref<16x128xf32, #tpu.memory_space<vmem>>, %arg5: memref<1x16x128xf32, #tpu.memory_space<vmem>>) attributes {dimension_semantics = [#tpu.dimension_semantics<parallel>, #tpu.dimension_semantics<parallel>], iteration_bounds = array<i64: 2, 2>, scalar_prefetch = 0 : i64, scratch_operands = 0 : i64, tpu.core_type = #tpu.core_type<tc>, window_params = [{transform_indices = @transform_0, window_bounds = array<i64: 1, 16, 128>}, {pipeline_mode = #tpu.pipeline_mode<synchronous>, transform_indices = @transform_1, window_bounds = array<i64: 128, 128>}, {transform_indices = @transform_2, window_bounds = array<i64: 16, 128>}, {transform_indices = @transform_3, window_bounds = array<i64: 1, 16, 128>}]} {
    %c0 = arith.constant 0 : index
    %c0_0 = arith.constant 0 : index
    %c0_1 = arith.constant 0 : index
    %0 = vector.load %arg2[%c0, %c0_0, %c0_1] : memref<1x16x128xbf16, #tpu.memory_space<vmem>>, vector<1x16x128xbf16>
    %1 = vector.shape_cast %0 : vector<1x16x128xbf16> to vector<16x128xbf16>
    %c0_2 = arith.constant 0 : index
    %c0_3 = arith.constant 0 : index
    %2 = vector.load %arg3[%c0_2, %c0_3] : memref<128x128xbf16, #tpu.memory_space<vmem>>, vector<128x128xbf16>
    %cst = arith.constant dense<0.000000e+00> : vector<16x128xf32>
    %3 = tpu.matmul %1, %2, %cst {dimension_numbers = #tpu.dot_dimension_numbers<[1], [0], [0], [1], [0, 0, 1, 1], [], []>} : vector<16x128xbf16>, vector<128x128xbf16>, vector<16x128xf32> -> vector<16x128xf32>
    %c0_4 = arith.constant 0 : index
    %c0_5 = arith.constant 0 : index
    %4 = vector.load %arg4[%c0_4, %c0_5] : memref<16x128xf32, #tpu.memory_space<vmem>>, vector<16x128xf32>
    %5 = arith.addf %3, %4 : vector<16x128xf32>
    %c0_6 = arith.constant 0 : index
    %c0_7 = arith.constant 0 : index
    %c0_8 = arith.constant 0 : index
    %6 = vector.load %arg5[%c0_6, %c0_7, %c0_8] : memref<1x16x128xf32, #tpu.memory_space<vmem>>, vector<1x16x128xf32>
    %7 = vector.shape_cast %6 : vector<1x16x128xf32> to vector<16x128xf32>
    %8 = vector.shape_cast %5 : vector<16x128xf32> to vector<1x16x128xf32>
    tpu.vector_store %arg5[%c0_6, %c0_7, %c0_8], %8 {strides = array<i32>} : memref<1x16x128xf32, #tpu.memory_space<vmem>>, vector<1x16x128xf32>,
    return
  }
  func.func @transform_0(%arg0: i32, %arg1: i32) -> (i32, i32, i32) {
    %c0_i32 = arith.constant 0 : i32
    %c0_i32_0 = arith.constant 0 : i32
    return %arg1, %arg0, %c0_i32 : i32, i32, i32
  }
  func.func @transform_1(%arg0: i32, %arg1: i32) -> (i32, i32) {
    %c0_i32 = arith.constant 0 : i32
    %c0_i32_0 = arith.constant 0 : i32
    %c0_i32_1 = arith.constant 0 : i32
    return %c0_i32, %c0_i32_0 : i32, i32
  }
  func.func @transform_2(%arg0: i32, %arg1: i32) -> (i32, i32) {
    %c0_i32 = arith.constant 0 : i32
    %c0_i32_0 = arith.constant 0 : i32
    return %arg0, %c0_i32 : i32, i32
  }
  func.func @transform_3(%arg0: i32, %arg1: i32) -> (i32, i32, i32) {
    %c0_i32 = arith.constant 0 : i32
    %c0_i32_0 = arith.constant 0 : i32
    return %arg1, %arg0, %c0_i32 : i32, i32, i32
  }
}

</mosaic_0001>

<bundles_post_ra>
// kernel: tpu_custom_call.1
= control target key start
LH: loop header
LB: loop body
LE: loop exit
PB: predicated region body
PF: predicated region fallthrough
CT: control target
= control target key end

     0   :  { %s1258_s0 = inlined_call_operand.hbm [shape: bf16[2,32,128], index: 0, kind: input, shape index: {}]   ;;  %s1259_s1 = inlined_call_operand.hbm [shape: bf16[128,128], index: 1, kind: input, shape index: {}]   ;;  %s1260_s2 = inlined_call_operand.hbm [shape: f32[32,128], index: 2, kind: input, shape index: {}]   ;;  %s1261_s3 = inlined_call_operand.hbm [shape: f32[2,32,128], index: 3, kind: output, shape index: {}]  }
   0x1   :  { %1273 = sst [smem:[#allocation20_spill]] %s1258_s0 }
   0x2   :  { %1274 = sst [smem:[#allocation21_spill]] %s1261_s3 }
   0x3   :  { %8 = vsyncpa [#allocation3], 0 }
   0x4   :  { %10 = vsyncpa [#allocation3 + $0x1], 0 }
   0x5   :  { %11 = vsyncpa [#allocation6], 0 }
   0x6   :  { %12 = vsyncpa [#allocation4], 0 }
   0x7   :  { %14 = vsyncpa [#allocation4 + $0x1], 0  ;;  %s957_s12 = smov 0   ;;  %s959_s13 = smov 0  }
   0x8   :  { %s961_s14 = smov 0   ;;  %s963_s15 = smov 0  }
   0x9   :  { %s965_s16 = smov 0   ;;  %s967_s17 = smov 0  }
   0xa   :  { %s969_s18 = smov 0   ;;  %s971_s19 = smov 0  }
   0xb   :  { %s973_s20 = smov 0   ;;  %s975_s21 = smov 0  }
   0xc   :  { %s977_s22 = smov 0  }
   0xd LB: > { %1275 = sst [smem:[#allocation13_spill]] %s903_s17  ;;  %s29_s23 = sadd.s32 1, %s915_s20  ;;  %s923_s22 = sphi %s977_s22, %s20_s22   ;;  %s919_s21 = sphi %s975_s21, %s1315_s21   ;;  %s915_s20 = sphi %s973_s20, %s1307_s20   ;;  %s911_s19 = sphi %s971_s19, %s1314_s19   ;;  %s907_s18 = sphi %s969_s18, %s1306_s18   ;;  %s903_s17 = sphi %s967_s17, %s1305_s17   ;;  %s899_s16 = sphi %s965_s16, %s1313_s16   ;;  %s895_s15 = sphi %s963_s15, %s1312_s15   ;;  %s891_s14 = sphi %s961_s14, %s1311_s14   ;;  %s887_s13 = sphi %s959_s13, %s1310_s13   ;;  %s883_s12 = sphi %s957_s12, %s1309_s12  }
   0xe   : > { %1276 = sst [smem:[#allocation14_spill]] %s907_s18  ;;  %s32_s24 = sadd.s32 1, %s919_s21 }
   0xf   : > { %1277 = sst [smem:[#allocation15_spill]] %s915_s20  ;;  %p30_p0 = scmp.ge.s32.totalorder %s29_s23, 2 }
  0x10   : > { %s41_s25 = sadd.s32 1, %s903_s17  ;;  %p48_p1 = scmp.ne.s32.totalorder %s903_s17, %s899_s16 }
  0x11   : > { %p1266_p2 = scmp.eq.s32.totalorder %s923_s22, 0  ;;  %s1317_s23 = smov (%p30_p0, %s29_s23), 0 }
  0x12   : > { %1278 = sst [smem:[#allocation16_spill]] %s1317_s23  ;;  %s1319_s24 = smov (!%p30_p0, %s32_s24), %s919_s21 }
  0x13   : > { %s36_s26 = ssub.s32 %s915_s20, %s1317_s23  ;;  %p1028_p3 = por %p1266_p2, %p48_p1 }
  0x14   : > { %p34_p4 = scmp.ge.s32.totalorder %s1319_s24, 2  ;;  %p1265_p5 = scmp.lt.s32.totalorder %s923_s22, 4 }
  0x15   : > { %s166_s28 = sand.u32 1, %s923_s22   ;;  %s168_s4 = sand.u32 1, %s903_s17  }
  0x16   : > { %s1321_s24 = smov (%p34_p4, %s1319_s24), 0  ;;  %s521_s5 = sshll.u32 %s168_s4, 3 }
  0x17   : > { %1280 = sst [smem:[#allocation17_spill]] %s1321_s24  ;;  %s1038_s29 = ssub.s32 %s919_s21, %s1321_s24 }
  0x18   : > { %s38_s30 = sor.u32 %s1038_s29, %s36_s26  ;;  %p86_p6 = scmp.eq.s32.totalorder %s1038_s29, 0 }
  0x19   : > { %p39_p7 = scmp.eq.s32.totalorder %s38_s30, 0  ;;  %s522_s6 = sshll.u32 %s919_s21, 1 }
  0x1a   : > { %s523_s8 = sshll.u32 %s915_s20, 2  ;;  %s170_s10 = scalar_lea.vmem [#allocation2], %s521_s5 }
  0x1b   : > { %s1045_s7 = scalar_select %p39_p7, %s903_s17, %s41_s25  }
  0x1c   : > { %s176_s9 = sadd.s32 %s523_s8, %s522_s6  ;;  %s179_s11 = sshll.u32 %s170_s10, 4  ;;  %s180_s11 = int_to_ptr.vmem [resolvable:$true] %s179_s11 }
  0x1d   : > { %1281 = sst [smem:[#allocation18_spill]] %s1045_s7  ;;  %s524_s23 = sshll.u32 %s176_s9, 6 }
  0x1e   : > { %s1282_s0 = sld [smem:[#allocation20_spill]]  ;;  %p1055_p8 = pnand %p1265_p5, %p1028_p3 }
  0x1f   : > { %s1059_s30 = scalar_lea.sflag [#allocation3], %s166_s28  ;;  %s726_s25 = scalar_lea.vmem %s180_s11, 128 }
  0x20   : > { %p715_p9 = pneg %p1055_p8  ;;  %p727_p10 = scmp.ne.s32.totalorder %s180_s11, %s726_s25 }
  0x21   : > { %s925_s4 = smov [#allocation2]  }
  0x22   : > { %p729_p11 = pnand %p727_p10, %p715_p9  ;;  %s731_s5 = sshll.u32 %s925_s4, 4  ;;  %s732_s5 = int_to_ptr.vmem [resolvable:$false] %s731_s5 }
  0x23   : > { %s733_s3 = scalar_lea.vmem %s732_s5, 256  ;;  %p734_p13 = scmp.lt.s32.totalorder %s180_s11, %s732_s5 }
  0x24   : > { %s178_s24 = scalar_lea.hbm %s1282_s0, %s524_s23  ;;  %p730_p12 = pneg %p729_p11 }
  0x25   : > { %p735_p0 = scmp.lt.s32.totalorder %s733_s3, %s726_s25 }
  0x27   : > { %p736_p4 = por %p735_p0, %p734_p13 }
  0x29   : > { %p737_p3 = pnand %p736_p4, %p730_p12 }
  0x2b   : > { %740 = shalt.err (!%p737_p3)
}
  0x2c   : > { %s926_s18 = smov 64   ;;  %s927_s23 = smov 4  }
  0x2d   : > { %595 = dma.hbm_to_vmem [thread:$0]  (!%p1055_p8), %s178_s24, 128, %s180_s11, %s1059_s30, %s926_s18, %s926_s18, %s927_s23  }
  0x2e   : > { %s1070_s27 = sadd.s32 4294967295, %s923_s22   ;;  %s517_s28 = sadd.s32 4294967294, %s923_s22  }
  0x2f   : > { %p54_p7 = scmp.ne.s32.totalorder %s899_s16, %s895_s15  ;;  %p1268_p9 = scmp.eq.s32.totalorder %s1070_s27, 0 }
  0x30   : > { %p101_p10 = scmp.ne.s32.totalorder %s887_s13, %s883_s12  ;;  %p127_p11 = scmp.eq.s32.totalorder %s1070_s27, 3 }
  0x31   : > { %p133_p12 = scmp.eq.s32.totalorder %s517_s28, 3  ;;  %p1081_p8 = por %p1268_p9, %p54_p7 }
  0x32   : > { %p1087_p13 = por %p101_p10, %p1268_p9  ;;  %p1094_p0 = por %p127_p11, %p48_p1 }
  0x33   : > { %s1284_s24 = scalar_select %p1081_p8, 1, 0 }
  0x34   : > { %s1285_s6 = scalar_select %p1087_p13, 1, 0 }
  0x35   : > { %s1286_s12 = scalar_select %p1094_p0, 1, 0 }
  0x36   : > { %p1098_p4 = por %p133_p12, %p54_p7  ;;  %p518_p3 = scmp.ge.s32.totalorder %s923_s22, 1 }
  0x37   : > { %p140_p5 = scmp.lt.s32.totalorder %s923_s22, 5  ;;  %s928_s10 = smov [#allocation5]  }
  0x38   : > { %s1287_s8 = scalar_select %p1098_p4, 1, 0 }
  0x39   : > { %p1104_p2 = pnand %p518_p3, %p140_p5  ;;  %s152_s11 = sshll.u32 %s928_s10, 4  ;;  %s153_s11 = int_to_ptr.vmem [resolvable:$true] %s152_s11 }
  0x3a   : > { %s88_s26 = sadd.s32 1, %s891_s14  ;;  %p95_p1 = scmp.ne.s32.totalorder %s891_s14, %s887_s13 }
  0x3b   : > { %p588_p10 = pneg %p1104_p2  ;;  %s191_s4 = sand.u32 1, %s891_s14  }
  0x3c   : > { %s1123_s5 = scalar_select %p86_p6, %s891_s14, %s88_s26  }
  0x3d   : > { %p1115_p11 = pnand %p588_p10, %p1268_p9  ;;  %p1291_p5 = scmp.eq.s32.totalorder %s923_s22, 0 }
  0x3e   : > { %1290 = sst [smem:[#allocation19_spill]] %s1123_s5  ;;  %s752_s28 = scalar_lea.vmem %s153_s11, 1024 }
  0x3f   : > { %p1127_p7 = por %p95_p1, %p1291_p5  ;;  %p743_p12 = pneg %p1115_p11 }
  0x40   : > { %p753_p3 = scmp.ne.s32.totalorder %s153_s11, %s752_s28  ;;  %p760_p10 = scmp.lt.s32.totalorder %s153_s11, %s153_s11 }
  0x41   : > { %p761_p9 = scmp.lt.s32.totalorder %s752_s28, %s752_s28 }
  0x42   : > { %p755_p4 = pnand %p753_p3, %p743_p12 }
  0x43   : > { %p762_p13 = por %p761_p9, %p760_p10 }
  0x44   : > { %p756_p0 = pneg %p755_p4 }
  0x46   : > { %p763_p8 = pnand %p762_p13, %p756_p0 }
  0x48   : > { %766 = shalt.err (!%p763_p8)
}
  0x49   : > { %591 = dma.hbm_to_vmem [thread:$0]  (!%p1115_p11), %s1259_s1, 1024, %s153_s11, [#allocation6], %s926_s18, %s926_s18, %s927_s23  }
  0x4a   : > { %s525_s26 = sshll.u32 %s191_s4, 4  ;;  %s548_s0 = sshll.u32 %s919_s21, 8 }
  0x4b   : > { %s199_s28 = scalar_lea.hbm %s1260_s2, %s548_s0  ;;  %s193_s17 = scalar_lea.vmem [#allocation7], %s525_s26 }
  0x4c   : > { %s200_s5 = sshll.u32 %s193_s17, 4  ;;  %p1293_p6 = scmp.lt.s32.totalorder %s923_s22, 4  ;;  %s201_s5 = int_to_ptr.vmem [resolvable:$true] %s200_s5 }
  0x4d   : > { %s780_s29 = scalar_lea.vmem %s201_s5, 256  ;;  %s929_s18 = smov [#allocation7]  }
  0x4e   : > { %p1149_p9 = pnand %p1293_p6, %p1127_p7  ;;  %p781_p13 = scmp.ne.s32.totalorder %s201_s5, %s780_s29 }
  0x4f   : > { %s785_s23 = sshll.u32 %s929_s18, 4  ;;  %s786_s23 = int_to_ptr.vmem [resolvable:$false] %s785_s23 }
  0x50   : > { %p769_p8 = pneg %p1149_p9  ;;  %s787_s0 = scalar_lea.vmem %s786_s23, 512 }
  0x51   : > { %p788_p1 = scmp.lt.s32.totalorder %s201_s5, %s786_s23  ;;  %p789_p11 = scmp.lt.s32.totalorder %s787_s0, %s780_s29 }
  0x52   : > { %p783_p0 = pnand %p781_p13, %p769_p8 }
  0x53   : > { %p790_p5 = por %p789_p11, %p788_p1 }
  0x54   : > { %p784_p4 = pneg %p783_p0 }
  0x56   : > { %p791_p12 = pnand %p790_p5, %p784_p4 }
  0x58   : > { %794 = shalt.err (!%p791_p12)
}
  0x59   : > { %s930_s17 = smov 128   ;;  %s931_s20 = smov 8  }
  0x5a   : > { %598 = dma.hbm_to_vmem [thread:$0]  (!%p1149_p9), %s199_s28, 256, %s201_s5, %s1059_s30, %s930_s17, %s930_s17, %s931_s20  }
  0x5b   : > { %212 = sbr.rel (%p1104_p2) target bundleno = 350 (0x15e), region = 32  ;;  %s214_s7 = sand.u32 (!%p1104_p2), 1, %s1070_s27  }
  0x5c   : > { %s1162_s11 = sand.u32 (!%p1104_p2), 1, %s899_s16   ;;  %s215_s3 = scalar_lea.sflag (!%p1104_p2), [#allocation3], %s214_s7 }
  0x5d   : > { %s529_s4 = sshll.u32 (!%p1104_p2), %s1162_s11, 3  ;;  %p1295_p7 = scmp.ne.s32.totalorder (!%p1104_p2), %s1284_s24, 0 }
  0x5e   : > { %s1165_s10 = scalar_lea.vmem (!%p1104_p2), [#allocation2], %s529_s4 }
  0x60   : > { %866 = dma.done.wait (%p1295_p7), %s215_s3, 128  }
  0x61   : > { %868 = vsyncadd (%p1295_p7), %s215_s3, 4294967168  ;;  %p1296_p3 = scmp.eq.s32.totalorder %s1070_s27, 0 }
  0x63   : > { %870 = dma.done.wait (%p1296_p3), [#allocation6], 1024   ;;  %p1297_p2 = pmov %p1296_p3 }
  0x64   : > { %s229_s30 = sand.u32 1, %s887_s13   ;;  %p1298_p10 = scmp.ne.s32.totalorder %s1285_s6, 0 }
  0x65   : > { %872 = vsyncadd (%p1297_p2), [#allocation6], 4294966272  ;;  %s1176_s9 = sshll.u32 %s229_s30, 4 }
  0x66   : > { %s231_s5 = scalar_lea.vmem [#allocation7], %s1176_s9 }
  0x67   : > { %874 = dma.done.wait (%p1298_p10), %s215_s3, 256  }
  0x68   : > { %876 = vsyncadd (%p1298_p10), %s215_s3, 4294967040  ;;  %v932_v0 = vmov 0.0   ;;  %vm933_vm0 = vmmov 0   ;;  %v704_v1 = vld [vmem:[#allocation5 + $0x38] sm:$0xff]   ;;  %v705_v2 = vld [vmem:[#allocation5 + $0x30] sm:$0xff]   ;;  %s1299_s27 = sld [smem:[#allocation14_spill]] }
  0x69   : > { %558 = vmatprep.subr.bf16.mxu0 %v932_v0  ;;  %574 = vmatprep.mubr.msk.bf16.mxu0 %vm933_vm0, %v932_v0  ;;  %v706_v3 = vld [vmem:[#allocation5 + $0x28] sm:$0xff]   ;;  %v707_v4 = vld [vmem:[#allocation5 + $0x20] sm:$0xff]   ;;  %v708_v5 = vld [vmem:[#allocation5 + $0x18] sm:$0xff]   ;;  %s543_s24 = sshll.u32 %s911_s19, 1  ;;  %s532_s26 = sshll.u32 %s1162_s11, 4 }
  0x6a   : > { %559 = vmatpush3.bf16.msra.mxu0 %v704_v1  ;;  %v709_v6 = vld [vmem:[#allocation5 + $0x10] sm:$0xff]   ;;  %v710_v7 = vld [vmem:[#allocation5 + $0x8] sm:$0xff]   ;;  %v711_v8 = vld [vmem:[#allocation5] sm:$0xff]   ;;  %s258_s25 = scalar_lea.vmem [#allocation8], %s532_s26  ;;  %s1300_s0 = sld [smem:[#allocation21_spill]] }
  0x6b   : > { %560 = vmatprep.subr.bf16.mxu0 %v932_v0  ;;  %v712_v9 = vld [vmem:[%s1165_s10] sm:$0xff]   ;;  %v281_v10 = vld [vmem:[%s231_s5] sm:$0xff]  ;;  %s396_s29 = sshll.u32 %s258_s25, 4  ;;  %s381_s20 = scalar_lea.sflag [#allocation4], %s1162_s11  ;;  %s1191_s29 = int_to_ptr.vmem [resolvable:$true] %s396_s29 }
  0x6c   : > { %v282_v14 = vld [vmem:[%s231_s5 + $0x8] sm:$0xff]  ;;  %s795_s7 = scalar_lea.vmem %s1191_s29, 256  ;;  %p1301_p9 = scmp.ne.s32.totalorder %s1286_s12, 0 }
  0x6d   : > { %p796_p6 = scmp.ne.s32.totalorder %s1191_s29, %s795_s7  ;;  %s934_s4 = smov [#allocation8]  }
  0x6e   : > { %561 = vmatpush3.bf16.msra.mxu0 %v705_v2  ;;  %s544_s6 = sshll.u32 %s1299_s27, 2  ;;  %s799_s3 = sshll.u32 %s934_s4, 4  ;;  %s800_s3 = int_to_ptr.vmem [resolvable:$false] %s799_s3 }
  0x6f   : > { %562 = vmatprep.subr.bf16.mxu0 %v932_v0  ;;  %s393_s28 = sadd.s32 %s544_s6, %s543_s24  ;;  %p797_p8 = pnand %p796_p6, %p1301_p9 }
  0x70   : > { %s545_s18 = sshll.u32 %s393_s28, 7  ;;  %s801_s10 = scalar_lea.vmem %s800_s3, 512 }
  0x71   : > { %s1196_s17 = scalar_lea.hbm %s1300_s0, %s545_s18  ;;  %p798_p13 = pneg %p797_p8 }
  0x72   : > { %563 = vmatpush3.bf16.msra.mxu0 %v706_v3  ;;  %p802_p0 = scmp.lt.s32.totalorder %s1191_s29, %s800_s3  ;;  %p803_p4 = scmp.lt.s32.totalorder %s801_s10, %s795_s7 }
  0x73   : > { %564 = vmatprep.subr.bf16.mxu0 %v932_v0 }
  0x74   : > { %p804_p1 = por %p803_p4, %p802_p0 }
  0x76   : > { %565 = vmatpush3.bf16.msra.mxu0 %v707_v4  ;;  %p805_p11 = pnand %p804_p1, %p798_p13 }
  0x77   : > { %566 = vmatprep.subr.bf16.mxu0 %v932_v0 }
  0x7a   : > { %567 = vmatpush3.bf16.msra.mxu0 %v708_v5 }
  0x7b   : > { %568 = vmatprep.subr.bf16.mxu0 %v932_v0 }
  0x7e   : > { %569 = vmatpush3.bf16.msra.mxu0 %v709_v6 }
  0x7f   : > { %570 = vmatprep.subr.bf16.mxu0 %v932_v0 }
  0x82   : > { %571 = vmatpush3.bf16.msra.mxu0 %v710_v7 }
  0x83   : > { %572 = vmatprep.subr.bf16.mxu0 %v932_v0 }
  0x86   : > { %573 = vmatpush3.bf16.msra.mxu0 %v711_v8 }
  0x89   : > { %575 = vmatmul.mubr.bf16.vlgmr.msra.gmra.mxu0 %v712_v9 }
 0x149   : > { %v371_v11 = vpop.f32.mrf.mxu0 }
 0x14a   : > { %v372_v12 = vadd.f32 %v371_v11, %v281_v10 }
 0x14b   : > { %v576_v13 = vpop.f32.mrf.mxu0 }
 0x14c   : > { %378 = vst [vmem:[%s258_s25] sm:$0xff] %v372_v12 }
 0x14d   : > { %v374_v15 = vpop.f32.mrf.mxu0 }
 0x14e   : > { %v375_v16 = vadd.f32 %v374_v15, %v282_v14 }
 0x14f   : > { %v577_v17 = vpop.f32.mrf.mxu0 }
 0x150   : > { %379 = vst [vmem:[%s258_s25 + $0x8] sm:$0xff] %v375_v16 }
 0x151   : > { %808 = shalt.err (!%p805_p11)
}
 0x152   : > { %s809_s30 = scalar_lea.hbm %s1196_s17, 256  ;;  %s813_s27 = scalar_lea.hbm %s1300_s0, 1024 }
 0x153   : > { %p810_p5 = scmp.ne.s32.totalorder %s1196_s17, %s809_s30  ;;  %p814_p3 = scmp.lt.s32.totalorder %s1196_s17, %s1300_s0 }
 0x154   : > { %p815_p2 = scmp.lt.s32.totalorder %s813_s27, %s809_s30 }
 0x155   : > { %p811_p12 = pnand %p810_p5, %p1301_p9 }
 0x156   : > { %p816_p10 = por %p815_p2, %p814_p3 }
 0x157   : > { %p812_p7 = pneg %p811_p12 }
 0x159   : > { %p817_p6 = pnand %p816_p10, %p812_p7 }
 0x15b   : > { %820 = shalt.err (!%p817_p6)
}
 0x15c   : > { %s935_s26 = smov 128   ;;  %s936_s28 = smov 8  }
 0x15d   : > { %586 = dma.vmem_to_hbm [thread:$0]  (%p1301_p9), %s1191_s29, 256, %s1196_s17, %s381_s20, %s935_s26, %s935_s26, %s936_s28  }
 0x15e PF: > { %p606_p8 = scmp.ge.s32.totalorder %s923_s22, 2  ;;  %s411_s25 = sand.u32 1, %s895_s15  }
 0x15f   : > { %p1302_p13 = scmp.ne.s32.totalorder %s1287_s8, 0  ;;  %s412_s18 = scalar_lea.sflag [#allocation4], %s411_s25 }
 0x161   : > { %p600_p0 = pnand %p606_p8, %p1302_p13 }
 0x163   : > { %p601_p4 = pneg %p600_p0 }
 0x165   : > { %878 = dma.done.wait (%p601_p4), %s412_s18, 256  }
 0x166   : > { %880 = vsyncadd (%p601_p4), %s412_s18, 4294967040  ;;  %s20_s22 = sadd.s32 1, %s923_s22   ;;  %s1303_s19 = sld [smem:[#allocation19_spill]] }
 0x167   : > { %p17_p1 = scmp.ge.s32.totalorder %s20_s22, 6   ;;  %s1304_s11 = sld [smem:[#allocation13_spill]] }
 0x168   : > { %s1305_s17 = sld [smem:[#allocation18_spill]]  ;;  %s1309_s12 = smov %s887_s13 }
 0x169   : > { %s1306_s18 = sld [smem:[#allocation15_spill]]  ;;  %s1310_s13 = smov %s891_s14 }
 0x16a   : > { %s1307_s20 = sld [smem:[#allocation16_spill]]  ;;  %s1312_s15 = smov %s899_s16 }
 0x16b   : > { %s1308_s29 = sld [smem:[#allocation17_spill]] }
 0x16c   : > { %s1311_s14 = smov %s1303_s19  ;;  %s1314_s19 = smov %s919_s21 }
 0x16d   : > { %s1313_s16 = smov %s1304_s11  ;;  %19 = sbr.rel (!%p17_p1) target bundleno = 13 (0xd), region = 92 }
 0x171   : > { %s1315_s21 = smov %s1308_s29 }
 0x172   :  { %417 = vsyncpa [#allocation3], 1 }
 0x173   :  { %419 = vsyncpa [#allocation3 + $0x1], 1 }
 0x174   :  { %420 = vsyncpa [#allocation6], 1 }
 0x175   :  { %421 = vsyncpa [#allocation4], 1 }
 0x176   :  { %423 = vsyncpa [#allocation4 + $0x1], 1 }

</bundles_post_ra>
